<compile_context>
chip_gen: v5e
topology: v5e:2x2
jax: 0.10.0
libtpu: 0.0.40
codegen_flags: <defaults>
</compile_context>

<pallas_src>
import functools
import math

import jax
import jax.numpy as jnp
from jax.experimental import pallas as pl
from jax.experimental.pallas import tpu as pltpu

LANE = 128     # vreg lane width  -> only the hidden dim is padded to this
SUBLANE = 8    # vreg sublane width -> batch tiles padded to this


def _round_up(v: int, m: int) -> int:
    return (v + m - 1) // m * m


def _pad2d(a, rows, cols):
    return jnp.pad(a, ((0, rows - a.shape[0]), (0, cols - a.shape[1])))


@functools.lru_cache(maxsize=1)
def _vmem_safe_cap() -> int:
    """Physical VMEM minus headroom (v7x: 64 MiB/TC; v5e/v6e: 128 MiB)."""
    try:
        cap = int(pltpu.get_tpu_info().vmem_capacity_bytes)
    except Exception:
        cap = 64 * 2**20      # conservative fallback (v7x-sized)
    return max(16 * 2**20, cap - 12 * 2**20)


def _choose_tm(batch: int) -> int:
    """Batch tile: big enough to amortize grid-step overhead, >=2 tiles when
    the batch is large so v7x's 2 TensorCores both get work."""
    b8 = _round_up(batch, SUBLANE)
    if b8 <= 1024:
        return b8                                   # single (or tiny) tile
    return min(4096, _round_up(pl.cdiv(b8, 2), SUBLANE))


def _embedding_kernel(x_ref, w1_ref, b1_ref, w2_ref, b2_ref, w3_ref, b3_ref,
                      o_ref):
    """Fused 3-layer MLP on one (TM, D_in) batch tile.

    x arrives f32 and is cast to bf16 in-kernel (free under the DMA); matmuls
    run bf16 on the MXU with f32 accumulation; bias add + tanh stay f32.
    """
    x = x_ref[...].astype(w1_ref.dtype)                          # (TM, D_in) bf16

    h1 = jnp.dot(x, w1_ref[...], preferred_element_type=jnp.float32)
    h1 = jnp.tanh(h1 + b1_ref[...])                              # f32 (EUP)
    # NOTE(v6e/v7x): if a bundle dump ever shows EUP as the binding slot,
    # compute tanh on bf16 here (v5e has no bf16 EUP -- keep f32 there).

    h2 = jnp.dot(h1.astype(w2_ref.dtype), w2_ref[...],
                 preferred_element_type=jnp.float32)
    h2 = jnp.tanh(h2 + b2_ref[...])                              # f32

    out = jnp.dot(h2.astype(w3_ref.dtype), w3_ref[...],
                  preferred_element_type=jnp.float32)
    o_ref[...] = (out + b3_ref[...]).astype(o_ref.dtype)         # (TM, D_in) store


def prepare_params(params, compute_dtype=jnp.bfloat16):
    """One-time prep (outside the per-call path): pad the hidden dim to 128
    and cast matmul weights to bf16. Biases stay f32. Padding is inert:
    tanh(0)=0 and the padded rows/cols of w2/w3 are zero."""
    d_in, h = params["w1"].shape
    hp = _round_up(h, LANE)
    return dict(
        w1=_pad2d(params["w1"], d_in, hp).astype(compute_dtype),   # (D_in, Hp)
        w2=_pad2d(params["w2"], hp, hp).astype(compute_dtype),     # (Hp, Hp)
        w3=_pad2d(params["w3"], hp, d_in).astype(compute_dtype),   # (Hp, D_in)
        b1=_pad2d(params["b1"], 1, hp).astype(jnp.float32),        # (1, Hp)
        b2=_pad2d(params["b2"], 1, hp).astype(jnp.float32),        # (1, Hp)
        b3=params["b3"].astype(jnp.float32),                       # (1, D_in)
    )


@functools.partial(jax.jit, static_argnames=("tm",))
def embedding_network_forward(x, prepared, *, tm=None):
    """x: (B, input_size) float32. prepared: output of prepare_params()."""
    B, D_in = x.shape
    Hp = prepared["w1"].shape[1]

    if tm is None:
        tm = _choose_tm(B)
    B_pad = _round_up(B, tm)

    xp = x if B_pad == B else jnp.pad(x, ((0, B_pad - B), (0, 0)))
    grid = (B_pad // tm,)

    # VMEM budget: resident weights + double-buffered f32 I/O tiles + f32/bf16
    # intermediates, capped by physical VMEM minus headroom.
    weight_bytes = (D_in * Hp + Hp * Hp + Hp * D_in) * 2 + (2 * Hp + D_in) * 4
    io_bytes = 2 * 2 * tm * D_in * 4               # x + out, double-buffered
    interm_bytes = 4 * tm * Hp * 4                 # h1/h2 f32 + bf16 temps
    vmem_limit = int(min(_vmem_safe_cap(),
                         max(16 * 2**20,
                             2 * (weight_bytes + io_bytes + interm_bytes))))

    # Advisory cost: what is actually DMA'd / computed (MXU works on Hp lanes).
    cost = pl.CostEstimate(
        flops=2 * B_pad * (D_in * Hp + Hp * Hp + Hp * D_in),
        transcendentals=2 * B_pad * Hp,
        bytes_accessed=B_pad * D_in * 4 * 2 + weight_bytes,
    )

    out_padded = pl.pallas_call(
        _embedding_kernel,
        out_shape=jax.ShapeDtypeStruct((B_pad, D_in), x.dtype),
        grid_spec=pltpu.PrefetchScalarGridSpec(
            num_scalar_prefetch=0,
            grid=grid,
            in_specs=[
                pl.BlockSpec((tm, D_in), lambda i: (i, 0)),   # x: streamed, f32
                pl.BlockSpec((D_in, Hp), lambda i: (0, 0)),   # w1: resident
                pl.BlockSpec((1, Hp), lambda i: (0, 0)),      # b1
                pl.BlockSpec((Hp, Hp), lambda i: (0, 0)),     # w2
                pl.BlockSpec((1, Hp), lambda i: (0, 0)),      # b2
                pl.BlockSpec((Hp, D_in), lambda i: (0, 0)),   # w3
                pl.BlockSpec((1, D_in), lambda i: (0, 0)),    # b3
            ],
            out_specs=pl.BlockSpec((tm, D_in), lambda i: (i, 0)),
        ),
        compiler_params=pltpu.CompilerParams(
            dimension_semantics=("parallel",),                # v7x: 2 TCs
            vmem_limit_bytes=vmem_limit,
        ),
        cost_estimate=cost,
    )(xp, prepared["w1"], prepared["b1"], prepared["w2"], prepared["b2"],
      prepared["w3"], prepared["b3"])

    return out_padded if B_pad == B else out_padded[:B, :]


def init_params(key, input_size, hidden_size):
    """Mirror PyTorch nn.Linear default init (uniform +-1/sqrt(fan_in)).

    Weights stored as (in_features, out_features) -- transpose of PyTorch's
    (out, in) -- so the kernel computes x @ W directly. Biases are (1, out).
    """
    ks = jax.random.split(key, 6)

    def lin(kw, kb, fan_in, fan_out):
        bound = 1.0 / math.sqrt(fan_in)
        w = jax.random.uniform(kw, (fan_in, fan_out), jnp.float32,
                               minval=-bound, maxval=bound)
        b = jax.random.uniform(kb, (1, fan_out), jnp.float32,
                               minval=-bound, maxval=bound)
        return w, b

    w1, b1 = lin(ks[0], ks[1], input_size, hidden_size)
    w2, b2 = lin(ks[2], ks[3], hidden_size, hidden_size)
    w3, b3 = lin(ks[4], ks[5], hidden_size, input_size)
    return dict(w1=w1, b1=b1, w2=w2, b2=b2, w3=w3, b3=b3)


def reference_forward(x, params, cast_dtype=None):
    """Pure-JAX reference of the PyTorch forward. `cast_dtype` optionally
    mimics the kernel's bf16 matmul operands (f32 accumulate / bias / tanh)."""
    def c(v):
        return v.astype(cast_dtype) if cast_dtype is not None else v

    h = jnp.tanh(jnp.dot(c(x), c(params["w1"]),
                         preferred_element_type=jnp.float32) + params["b1"])
    h = jnp.tanh(jnp.dot(c(h), c(params["w2"]),
                         preferred_element_type=jnp.float32) + params["b2"])
    return jnp.dot(c(h), c(params["w3"]),
                   preferred_element_type=jnp.float32) + params["b3"]


if __name__ == "__main__":
    input_size = 16
    hidden_size = 32

    key = jax.random.PRNGKey(0)
    k_x1, k_x2, k_p = jax.random.split(key, 3)

    params = init_params(k_p, input_size, hidden_size)
    prepared = prepare_params(params)          # one-time pad/cast, outside jit

    # Primary small-shape check (batch = 8).
    x = jax.random.normal(k_x1, (8, input_size), jnp.float32)
    out = jax.block_until_ready(embedding_network_forward(x, prepared))
    assert out.shape == (8, input_size)

    ref_bf16 = reference_forward(x, params, cast_dtype=jnp.bfloat16)
    assert jnp.allclose(out, ref_bf16, atol=1e-3, rtol=1e-3), \
        "mismatch vs bf16 reference"
    ref_f32 = reference_forward(x, params)
    assert jnp.allclose(out, ref_f32, atol=1e-1, rtol=1e-1), \
        "mismatch vs f32 reference"

    # Secondary check: batch not a multiple of the sublane/tile (exercises the
    # row-pad + slice path).
    x2 = jax.random.normal(k_x2, (13, input_size), jnp.float32)
    out2 = jax.block_until_ready(embedding_network_forward(x2, prepared))
    assert out2.shape == (13, input_size)
    ref2 = reference_forward(x2, params, cast_dtype=jnp.bfloat16)
    assert jnp.allclose(out2, ref2, atol=1e-3, rtol=1e-3), \
        "mismatch vs bf16 reference (padded batch)"

    print("KERNEL_OK")
</pallas_src>

<mosaic_0001>
module attributes {stable_mosaic.version = 11 : i64} {
  func.func @_embedding_kernel(%arg0: i32, %arg1: memref<8x16xf32, #tpu.memory_space<vmem>>, %arg2: memref<16x128xbf16, #tpu.memory_space<vmem>>, %arg3: memref<1x128xf32, #tpu.memory_space<vmem>>, %arg4: memref<128x128xbf16, #tpu.memory_space<vmem>>, %arg5: memref<1x128xf32, #tpu.memory_space<vmem>>, %arg6: memref<128x16xbf16, #tpu.memory_space<vmem>>, %arg7: memref<1x16xf32, #tpu.memory_space<vmem>>, %arg8: memref<8x16xf32, #tpu.memory_space<vmem>>) attributes {dimension_semantics = [#tpu.dimension_semantics<parallel>], iteration_bounds = array<i64: 1>, scalar_prefetch = 0 : i64, scratch_operands = 0 : i64, tpu.core_type = #tpu.core_type<tc>, window_params = [{transform_indices = @transform_0, window_bounds = array<i64: 8, 16>}, {pipeline_mode = #tpu.pipeline_mode<synchronous>, transform_indices = @transform_1, window_bounds = array<i64: 16, 128>}, {pipeline_mode = #tpu.pipeline_mode<synchronous>, transform_indices = @transform_2, window_bounds = array<i64: 1, 128>}, {pipeline_mode = #tpu.pipeline_mode<synchronous>, transform_indices = @transform_3, window_bounds = array<i64: 128, 128>}, {pipeline_mode = #tpu.pipeline_mode<synchronous>, transform_indices = @transform_4, window_bounds = array<i64: 1, 128>}, {pipeline_mode = #tpu.pipeline_mode<synchronous>, transform_indices = @transform_5, window_bounds = array<i64: 128, 16>}, {pipeline_mode = #tpu.pipeline_mode<synchronous>, transform_indices = @transform_6, window_bounds = array<i64: 1, 16>}, {transform_indices = @transform_7, window_bounds = array<i64: 8, 16>}]} {
    %c0 = arith.constant 0 : index
    %c0_0 = arith.constant 0 : index
    %0 = vector.load %arg1[%c0, %c0_0] : memref<8x16xf32, #tpu.memory_space<vmem>>, vector<8x16xf32>
    %1 = arith.truncf %0 : vector<8x16xf32> to vector<8x16xbf16>
    %c0_1 = arith.constant 0 : index
    %c0_2 = arith.constant 0 : index
    %2 = vector.load %arg2[%c0_1, %c0_2] : memref<16x128xbf16, #tpu.memory_space<vmem>>, vector<16x128xbf16>
    %cst = arith.constant dense<0.000000e+00> : vector<8x128xf32>
    %3 = tpu.matmul %1, %2, %cst {dimension_numbers = #tpu.dot_dimension_numbers<[1], [0], [0], [1], [0, 0, 1, 1], [], []>} : vector<8x16xbf16>, vector<16x128xbf16>, vector<8x128xf32> -> vector<8x128xf32>
    %c0_3 = arith.constant 0 : index
    %c0_4 = arith.constant 0 : index
    %4 = vector.load %arg3[%c0_3, %c0_4] : memref<1x128xf32, #tpu.memory_space<vmem>>, vector<1x128xf32>
    %5 = vector.broadcast %4 : vector<1x128xf32> to vector<8x128xf32>
    %6 = arith.addf %3, %5 : vector<8x128xf32>
    %7 = math.tanh %6 : vector<8x128xf32>
    %8 = arith.truncf %7 : vector<8x128xf32> to vector<8x128xbf16>
    %c0_5 = arith.constant 0 : index
    %c0_6 = arith.constant 0 : index
    %9 = vector.load %arg4[%c0_5, %c0_6] : memref<128x128xbf16, #tpu.memory_space<vmem>>, vector<128x128xbf16>
    %cst_7 = arith.constant dense<0.000000e+00> : vector<8x128xf32>
    %10 = tpu.matmul %8, %9, %cst_7 {dimension_numbers = #tpu.dot_dimension_numbers<[1], [0], [0], [1], [0, 0, 1, 1], [], []>} : vector<8x128xbf16>, vector<128x128xbf16>, vector<8x128xf32> -> vector<8x128xf32>
    %c0_8 = arith.constant 0 : index
    %c0_9 = arith.constant 0 : index
    %11 = vector.load %arg5[%c0_8, %c0_9] : memref<1x128xf32, #tpu.memory_space<vmem>>, vector<1x128xf32>
    %12 = vector.broadcast %11 : vector<1x128xf32> to vector<8x128xf32>
    %13 = arith.addf %10, %12 : vector<8x128xf32>
    %14 = math.tanh %13 : vector<8x128xf32>
    %15 = arith.truncf %14 : vector<8x128xf32> to vector<8x128xbf16>
    %c0_10 = arith.constant 0 : index
    %c0_11 = arith.constant 0 : index
    %16 = vector.load %arg6[%c0_10, %c0_11] : memref<128x16xbf16, #tpu.memory_space<vmem>>, vector<128x16xbf16>
    %cst_12 = arith.constant dense<0.000000e+00> : vector<8x16xf32>
    %17 = tpu.matmul %15, %16, %cst_12 {dimension_numbers = #tpu.dot_dimension_numbers<[1], [0], [0], [1], [0, 0, 1, 1], [], []>} : vector<8x128xbf16>, vector<128x16xbf16>, vector<8x16xf32> -> vector<8x16xf32>
    %c0_13 = arith.constant 0 : index
    %c0_14 = arith.constant 0 : index
    %18 = vector.load %arg7[%c0_13, %c0_14] : memref<1x16xf32, #tpu.memory_space<vmem>>, vector<1x16xf32>
    %19 = vector.broadcast %18 : vector<1x16xf32> to vector<8x16xf32>
    %20 = arith.addf %17, %19 : vector<8x16xf32>
    %c0_15 = arith.constant 0 : index
    %c0_16 = arith.constant 0 : index
    %21 = vector.load %arg8[%c0_15, %c0_16] : memref<8x16xf32, #tpu.memory_space<vmem>>, vector<8x16xf32>
    tpu.vector_store %arg8[%c0_15, %c0_16], %20 {strides = array<i32>} : memref<8x16xf32, #tpu.memory_space<vmem>>, vector<8x16xf32>,
    return
  }
  func.func @transform_0(%arg0: i32) -> (i32, i32) {
    %c0_i32 = arith.constant 0 : i32
    %c0_i32_0 = arith.constant 0 : i32
    return %arg0, %c0_i32 : i32, i32
  }
  func.func @transform_1(%arg0: i32) -> (i32, i32) {
    %c0_i32 = arith.constant 0 : i32
    %c0_i32_0 = arith.constant 0 : i32
    %c0_i32_1 = arith.constant 0 : i32
    return %c0_i32, %c0_i32_0 : i32, i32
  }
  func.func @transform_2(%arg0: i32) -> (i32, i32) {
    %c0_i32 = arith.constant 0 : i32
    %c0_i32_0 = arith.constant 0 : i32
    %c0_i32_1 = arith.constant 0 : i32
    return %c0_i32, %c0_i32_0 : i32, i32
  }
  func.func @transform_3(%arg0: i32) -> (i32, i32) {
    %c0_i32 = arith.constant 0 : i32
    %c0_i32_0 = arith.constant 0 : i32
    %c0_i32_1 = arith.constant 0 : i32
    return %c0_i32, %c0_i32_0 : i32, i32
  }
  func.func @transform_4(%arg0: i32) -> (i32, i32) {
    %c0_i32 = arith.constant 0 : i32
    %c0_i32_0 = arith.constant 0 : i32
    %c0_i32_1 = arith.constant 0 : i32
    return %c0_i32, %c0_i32_0 : i32, i32
  }
  func.func @transform_5(%arg0: i32) -> (i32, i32) {
    %c0_i32 = arith.constant 0 : i32
    %c0_i32_0 = arith.constant 0 : i32
    %c0_i32_1 = arith.constant 0 : i32
    return %c0_i32, %c0_i32_0 : i32, i32
  }
  func.func @transform_6(%arg0: i32) -> (i32, i32) {
    %c0_i32 = arith.constant 0 : i32
    %c0_i32_0 = arith.constant 0 : i32
    %c0_i32_1 = arith.constant 0 : i32
    return %c0_i32, %c0_i32_0 : i32, i32
  }
  func.func @transform_7(%arg0: i32) -> (i32, i32) {
    %c0_i32 = arith.constant 0 : i32
    %c0_i32_0 = arith.constant 0 : i32
    return %arg0, %c0_i32 : i32, i32
  }
}

</mosaic_0001>

<bundles_post_ra>
// kernel: embedding_network_forward.1
= control target key start
LH: loop header
LB: loop body
LE: loop exit
PB: predicated region body
PF: predicated region fallthrough
CT: control target
= control target key end

     0   :  { %12 = vsyncpa [#allocation3], 0  ;;  %s520_s0 = inlined_call_operand.vmem [shape: f32[8,16], index: 0, kind: input, shape index: {}]   ;;  %s521_s1 = inlined_call_operand.hbm [shape: bf16[16,128], index: 1, kind: input, shape index: {}]   ;;  %s522_s2 = inlined_call_operand.vmem [shape: f32[1,128], index: 2, kind: input, shape index: {}]   ;;  %s523_s3 = inlined_call_operand.vmem [shape: bf16[128,128], index: 3, kind: input, shape index: {}]   ;;  %s524_s4 = inlined_call_operand.vmem [shape: f32[1,128], index: 4, kind: input, shape index: {}]   ;;  %s525_s5 = inlined_call_operand.vmem [shape: bf16[128,16], index: 5, kind: input, shape index: {}]   ;;  %s526_s6 = inlined_call_operand.vmem [shape: f32[1,16], index: 6, kind: input, shape index: {}]   ;;  %s527_s7 = inlined_call_operand.hbm [shape: f32[8,16], index: 7, kind: output, shape index: {}]  }
   0x1   :  { %13 = vsyncpa [#allocation4], 0  ;;  %s20_s26 = sshll.u32 %s521_s1, 4  ;;  %s408_s27 = smov [#allocation2]   ;;  %s21_s26 = int_to_ptr.hbm [resolvable:$true] %s20_s26 }
   0x2   :  { %s22_s28 = sshll.u32 %s408_s27, 4  ;;  %s409_s29 = smov 64   ;;  %s23_s28 = int_to_ptr.vmem [resolvable:$true] %s22_s28 }
   0x3   :  { %s410_s30 = smov 4  }
   0x4   :  { %28 = dma.hbm_to_vmem [thread:$0]  %s21_s26, 128, %s23_s28, [#allocation3], %s409_s29, %s409_s29, %s410_s30  }
   0x5   :  { %404 = dma.done.wait [#allocation3], 128  }
   0x6   :  { %405 = vsyncadd [#allocation3], 4294967168  ;;  %v328_v0 = vld [vmem:[#allocation2] sm:$0xff]  ;;  %v336_v2 = vld [vmem:[%s523_s3 + $0x38] sm:$0xff]  ;;  %vm58_vm0 = vcmask 130048   ;;  %s411_s19 = smov [#allocation5]  }
   0x7   :  { %v44_v1 = vld [vmem:[%s520_s0] sm:$0xff]  ;;  %69 = vmatpush.bf16.msra.mxu0 %v328_v0  ;;  %145 = vmatpush.bf16.msra.mxu1 %v336_v2  ;;  %v335_v4 = vld [vmem:[%s523_s3 + $0x30] sm:$0xff]  ;;  %v334_v5 = vld [vmem:[%s523_s3 + $0x28] sm:$0xff]  ;;  %s247_s20 = sshll.u32 %s411_s19, 4  ;;  %s249_s22 = sshll.u32 %s527_s7, 4  ;;  %s248_s20 = int_to_ptr.vmem [resolvable:$true] %s247_s20  ;;  %s250_s22 = int_to_ptr.hbm [resolvable:$true] %s249_s22 }
   0x8   :  { %v45_v3 = vpack.c.bf16 %v44_v1, %v44_v1  ;;  %v333_v6 = vld [vmem:[%s523_s3 + $0x20] sm:$0xff]  ;;  %v332_v7 = vld [vmem:[%s523_s3 + $0x18] sm:$0xff]  ;;  %v331_v8 = vld [vmem:[%s523_s3 + $0x10] sm:$0xff] }
   0x9   :  { %v330_v9 = vld [vmem:[%s523_s3 + $0x8] sm:$0xff]  ;;  %v329_v10 = vld [vmem:[%s523_s3] sm:$0xff]  ;;  %v344_v11 = vld [vmem:[%s525_s5 + $0x38] sm:$0xff] }
   0xa   :  { %263 = vmatmul.msk.bf16.vlgmr.msra.gmra.mxu0 %vm58_vm0, %v45_v3  ;;  %228 = vmatpush.bf16.msra.mxu2 %v344_v11  ;;  %v343_v12 = vld [vmem:[%s525_s5 + $0x30] sm:$0xff]  ;;  %v342_v13 = vld [vmem:[%s525_s5 + $0x28] sm:$0xff]  ;;  %v341_v14 = vld [vmem:[%s525_s5 + $0x20] sm:$0xff] }
   0xb   :  { %146 = vmatpush.bf16.msra.mxu1 %v335_v4  ;;  %v340_v15 = vld [vmem:[%s525_s5 + $0x18] sm:$0xff]  ;;  %v349_v16 = vld [vmem:[%s522_s2] ss:$0 sm:$0xff]  ;;  %v339_v22 = vld [vmem:[%s525_s5 + $0x10] sm:$0xff] }
   0xc   :  { %v338_v23 = vld [vmem:[%s525_s5 + $0x8] sm:$0xff]  ;;  %v337_v24 = vld [vmem:[%s525_s5] sm:$0xff] }
   0xd   :  { %v350_v25 = vld [vmem:[%s524_s4] ss:$0 sm:$0xff] }
   0xe   :  { %229 = vmatpush.bf16.msra.mxu2 %v343_v12  ;;  %v351_v31 = vld [vmem:[%s526_s6] ss:$0 sm:$0xff] }
   0xf   :  { %147 = vmatpush.bf16.msra.mxu1 %v334_v5 }
  0x12   :  { %230 = vmatpush.bf16.msra.mxu2 %v342_v13 }
  0x13   :  { %148 = vmatpush.bf16.msra.mxu1 %v333_v6 }
  0x16   :  { %231 = vmatpush.bf16.msra.mxu2 %v341_v14 }
  0x17   :  { %149 = vmatpush.bf16.msra.mxu1 %v332_v7 }
  0x1a   :  { %232 = vmatpush.bf16.msra.mxu2 %v340_v15 }
  0x1b   :  { %150 = vmatpush.bf16.msra.mxu1 %v331_v8 }
  0x1e   :  { %233 = vmatpush.bf16.msra.mxu2 %v339_v22 }
  0x1f   :  { %151 = vmatpush.bf16.msra.mxu1 %v330_v9 }
  0x22   :  { %234 = vmatpush.bf16.msra.mxu2 %v338_v23 }
  0x23   :  { %152 = vmatpush.bf16.msra.mxu1 %v329_v10 }
  0x26   :  { %235 = vmatpush.bf16.msra.mxu2 %v337_v24 }
  0x87   :  { %v71_v17 = vpop.f32.mrf.mxu0 }
  0x88   :  { %v72_v18 = vadd.f32 %v349_v16, %v71_v17 }
  0x8a   :  { %352 = vtanh.f32 %v72_v18 }
  0x8f   :  { %v73_v19 = vpop.f32.mrf.mxu0 }
  0x90   :  { %v353_v20 = vpop.eup %352 }
  0x91   :  { %v76_v21 = vpack.c.bf16 %v353_v20, %v353_v20 }
  0x93   :  { %153 = vmatmul.bf16.vlgmr.msra.gmra.mxu1 %v76_v21 }
 0x110   :  { %v154_v26 = vpop.f32.mrf.mxu1 }
 0x111   :  { %v155_v27 = vadd.f32 %v350_v25, %v154_v26 }
 0x113   :  { %354 = vtanh.f32 %v155_v27 }
 0x118   :  { %v156_v28 = vpop.f32.mrf.mxu1 }
 0x119   :  { %v355_v29 = vpop.eup %354 }
 0x11a   :  { %v159_v30 = vpack.c.bf16 %v355_v29, %v355_v29 }
 0x11c   :  { %236 = vmatmul.bf16.vlgmr.msra.gmra.mxu2 %v159_v30 }
 0x19f   :  { %v237_v32 = vpop.f32.mrf.mxu2 }
 0x1a0   :  { %v238_v33 = vadd.f32 %v351_v31, %v237_v32 }
 0x1a2   :  { %241 = vst.msk [vmem:[#allocation5] sm:$0xff] %vm58_vm0, %v238_v33 }
 0x1a3   :  { %252 = dma.vmem_to_hbm [thread:$0]  %s248_s20, 128, %s250_s22, [#allocation4]  }
 0x1a7   :  { %v239_v34 = vpop.f32.mrf.mxu2 }
 0x1a8   :  { %406 = dma.done.wait [#allocation4], 128  }
 0x1a9   :  { %407 = vsyncadd [#allocation4], 4294967168 }
 0x1aa   :  { %257 = vsyncpa [#allocation3], 1 }
 0x1ab   :  { %258 = vsyncpa [#allocation4], 1 }

</bundles_post_ra>
